<compile_context>
chip_gen: v7x
topology: tpu7x:2x2x1
jax: 0.10.0
libtpu: 0.0.40
codegen_flags: <defaults>
</compile_context>

<pallas_src>
import jax
import jax.numpy as jnp
from jax.experimental import pallas as pl
from jax.experimental.pallas import tpu as pltpu


def mlp_kernel(x_ref, w1_ref, b1_ref, w2_ref, b2_ref,
               w3_ref, b3_ref, w4_ref, b4_ref, o_ref):
    # Feature-major tile: x_ref is [6, TILE_B]; all intermediates are
    # [F, TILE_B] with TILE_B on the lane axis. f32 accumulation throughout.
    x = x_ref[...]

    h = jnp.dot(w1_ref[...], x, preferred_element_type=jnp.float32) + b1_ref[...]
    h = jnp.maximum(h, 0.0)                                   # [10, TILE_B]

    h = jnp.dot(w2_ref[...], h, preferred_element_type=jnp.float32) + b2_ref[...]
    h = jnp.maximum(h, 0.0)                                   # [5, TILE_B]

    h = jnp.dot(w3_ref[...], h, preferred_element_type=jnp.float32) + b3_ref[...]
    h = jnp.maximum(h, 0.0)                                   # [3, TILE_B]

    logits = jnp.dot(w4_ref[...], h, preferred_element_type=jnp.float32) + b4_ref[...]

    # Numerically stable softmax over the feature rows (original dim=1),
    # done as sublane-wise VPU max/add over the 3 rows -> no XLU reduction.
    n_out = logits.shape[0]
    m = logits[0:1, :]
    for r in range(1, n_out):
        m = jnp.maximum(m, logits[r:r + 1, :])
    e = jnp.exp(logits - m)
    denom = e[0:1, :]
    for r in range(1, n_out):
        denom = denom + e[r:r + 1, :]
    # Exact divide (not approx reciprocal): kernel is memory-bound, EUP/VPU
    # cost is free, and rows sum to 1 to f32 precision.
    o_ref[...] = (e / denom).astype(o_ref.dtype)


def simple_nn_forward_feature_major(x_fm, params, *, tile_b=65536):
    """x_fm: [F_in, B] feature-major input. Returns [F_out, B] probabilities."""
    (w1, b1), (w2, b2), (w3, b3), (w4, b4) = params
    f_in, batch = x_fm.shape
    out_size = w4.shape[0]

    # Lane-axis tile: multiple of 128 when tiling; if the whole batch fits in
    # one tile, use the full (possibly unaligned) batch as the block so the
    # block equals the array extent.
    tile_b = max(128, (int(tile_b) // 128) * 128)
    tb = batch if batch <= tile_b else tile_b
    grid = (pl.cdiv(batch, tb),)   # ragged last block handled by masked writes

    x_spec = pl.BlockSpec((f_in, tb), lambda i: (0, i))
    o_spec = pl.BlockSpec((out_size, tb), lambda i: (0, i))

    def resident(arr):
        # Full-array block, same block index every grid step -> stays resident
        # in VMEM, no per-step re-fetch.
        return pl.BlockSpec(arr.shape, lambda i: (0, 0))

    return pl.pallas_call(
        mlp_kernel,
        out_shape=jax.ShapeDtypeStruct((out_size, batch), jnp.float32),
        grid=grid,
        in_specs=[x_spec,
                  resident(w1), resident(b1),
                  resident(w2), resident(b2),
                  resident(w3), resident(b3),
                  resident(w4), resident(b4)],
        out_specs=o_spec,
        compiler_params=pltpu.CompilerParams(
            dimension_semantics=("parallel",),
            # Explicit, generation-portable budget: > default scoped VMEM on
            # v5e (16 MiB) / v6e,v7x (32 MiB), < v7x physical 64 MiB.
            vmem_limit_bytes=48 * 1024 * 1024,
        ),
    )(x_fm, w1, b1, w2, b2, w3, b3, w4, b4)


def simple_nn_forward(x, params, *, tile_b=65536):
    """Torch-layout wrapper: x is [B, F_in]; returns [B, F_out] softmax probs.

    The one-time transposes are wrapper-side layout plumbing (XLA), keeping the
    kernel fully lane-dense.
    """
    out_fm = simple_nn_forward_feature_major(x.T, params, tile_b=tile_b)
    return out_fm.T


# ----------------------- parameter init (matches torch) -----------------------

def xavier_uniform(key, fan_in, fan_out):
    # torch.nn.init.xavier_uniform_ (gain=1); kept in torch's [out, in] layout
    # so the feature-major kernel computes W @ x directly.
    limit = (6.0 / (fan_in + fan_out)) ** 0.5
    return jax.random.uniform(key, (fan_out, fan_in), jnp.float32, -limit, limit)


def linear_bias_init(key, fan_in, fan_out):
    # torch default Linear bias init: U(-1/sqrt(fan_in), 1/sqrt(fan_in)),
    # stored [out, 1] to broadcast over the lane (batch) axis.
    bound = 1.0 / (fan_in ** 0.5)
    return jax.random.uniform(key, (fan_out, 1), jnp.float32, -bound, bound)


def make_params(key, sizes=(6, 10, 5, 3, 3)):
    params = []
    for i in range(len(sizes) - 1):
        key, kw, kb = jax.random.split(key, 3)
        fan_in, fan_out = sizes[i], sizes[i + 1]
        params.append((xavier_uniform(kw, fan_in, fan_out),
                       linear_bias_init(kb, fan_in, fan_out)))
    return params


def reference_forward(x, params):
    # Pure-JAX reference of the PyTorch forward pass (batch-major).
    h = x
    n = len(params)
    for i, (w, b) in enumerate(params):
        h = h @ w.T + b[:, 0]
        if i < n - 1:
            h = jnp.maximum(h, 0.0)
    return jax.nn.softmax(h, axis=1)


if __name__ == "__main__":
    key = jax.random.PRNGKey(0)
    kp, kx_small, kx_big = jax.random.split(key, 3)

    params = make_params(kp)  # 6 -> 10 -> 5 -> 3 -> 3

    # Small shape consistent with the module: batch=8, input_size=6.
    x = jax.random.normal(kx_small, (8, 6), jnp.float32)
    out = jax.block_until_ready(simple_nn_forward(x, params))
    assert out.shape == (8, 3)
    assert bool(jnp.allclose(jnp.sum(out, axis=1), 1.0, atol=2e-3))
    assert bool(jnp.allclose(out, reference_forward(x, params), atol=2e-3))

    # Moderate batch with a small explicit tile to exercise the multi-step,
    # double-buffered path and the ragged final tile (2500 = 4*512 + 452)
    # without any host-side padding or slicing passes.
    x_big = jax.random.normal(kx_big, (2500, 6), jnp.float32)
    out_big = jax.block_until_ready(simple_nn_forward(x_big, params, tile_b=512))
    assert out_big.shape == (2500, 3)
    assert bool(jnp.allclose(jnp.sum(out_big, axis=1), 1.0, atol=2e-3))
    assert bool(jnp.allclose(out_big, reference_forward(x_big, params), atol=2e-3))

    print("KERNEL_OK")
</pallas_src>

<mosaic_0001>
module attributes {stable_mosaic.version = 11 : i64} {
  func.func @mlp_kernel(%arg0: i32, %arg1: memref<6x8xf32, #tpu.memory_space<vmem>>, %arg2: memref<10x6xf32, #tpu.memory_space<vmem>>, %arg3: memref<10x1xf32, #tpu.memory_space<vmem>>, %arg4: memref<5x10xf32, #tpu.memory_space<vmem>>, %arg5: memref<5x1xf32, #tpu.memory_space<vmem>>, %arg6: memref<3x5xf32, #tpu.memory_space<vmem>>, %arg7: memref<3x1xf32, #tpu.memory_space<vmem>>, %arg8: memref<3x3xf32, #tpu.memory_space<vmem>>, %arg9: memref<3x1xf32, #tpu.memory_space<vmem>>, %arg10: memref<3x8xf32, #tpu.memory_space<vmem>>) attributes {dimension_semantics = [#tpu.dimension_semantics<parallel>], iteration_bounds = array<i64: 1>, scalar_prefetch = 0 : i64, scratch_operands = 0 : i64, tpu.core_type = #tpu.core_type<tc>, window_params = [{transform_indices = @transform_0, window_bounds = array<i64: 6, 8>}, {pipeline_mode = #tpu.pipeline_mode<synchronous>, transform_indices = @transform_1, window_bounds = array<i64: 10, 6>}, {pipeline_mode = #tpu.pipeline_mode<synchronous>, transform_indices = @transform_2, window_bounds = array<i64: 10, 1>}, {pipeline_mode = #tpu.pipeline_mode<synchronous>, transform_indices = @transform_3, window_bounds = array<i64: 5, 10>}, {pipeline_mode = #tpu.pipeline_mode<synchronous>, transform_indices = @transform_4, window_bounds = array<i64: 5, 1>}, {pipeline_mode = #tpu.pipeline_mode<synchronous>, transform_indices = @transform_5, window_bounds = array<i64: 3, 5>}, {pipeline_mode = #tpu.pipeline_mode<synchronous>, transform_indices = @transform_6, window_bounds = array<i64: 3, 1>}, {pipeline_mode = #tpu.pipeline_mode<synchronous>, transform_indices = @transform_7, window_bounds = array<i64: 3, 3>}, {pipeline_mode = #tpu.pipeline_mode<synchronous>, transform_indices = @transform_8, window_bounds = array<i64: 3, 1>}, {transform_indices = @transform_9, window_bounds = array<i64: 3, 8>}]} {
    %c0 = arith.constant 0 : index
    %c0_0 = arith.constant 0 : index
    %0 = vector.load %arg1[%c0, %c0_0] : memref<6x8xf32, #tpu.memory_space<vmem>>, vector<6x8xf32>
    %c0_1 = arith.constant 0 : index
    %c0_2 = arith.constant 0 : index
    %1 = vector.load %arg2[%c0_1, %c0_2] : memref<10x6xf32, #tpu.memory_space<vmem>>, vector<10x6xf32>
    %cst = arith.constant dense<0.000000e+00> : vector<10x8xf32>
    %2 = tpu.matmul %1, %0, %cst {dimension_numbers = #tpu.dot_dimension_numbers<[1], [0], [0], [1], [0, 0, 1, 1], [], []>} : vector<10x6xf32>, vector<6x8xf32>, vector<10x8xf32> -> vector<10x8xf32>
    %c0_3 = arith.constant 0 : index
    %c0_4 = arith.constant 0 : index
    %3 = vector.load %arg3[%c0_3, %c0_4] : memref<10x1xf32, #tpu.memory_space<vmem>>, vector<10x1xf32>
    %4 = vector.broadcast %3 : vector<10x1xf32> to vector<10x8xf32>
    %5 = arith.addf %2, %4 : vector<10x8xf32>
    %cst_5 = arith.constant 0.000000e+00 : f32
    %6 = vector.broadcast %cst_5 : f32 to vector<10x8xf32>
    %7 = arith.maximumf %5, %6 : vector<10x8xf32>
    %c0_6 = arith.constant 0 : index
    %c0_7 = arith.constant 0 : index
    %8 = vector.load %arg4[%c0_6, %c0_7] : memref<5x10xf32, #tpu.memory_space<vmem>>, vector<5x10xf32>
    %cst_8 = arith.constant dense<0.000000e+00> : vector<5x8xf32>
    %9 = tpu.matmul %8, %7, %cst_8 {dimension_numbers = #tpu.dot_dimension_numbers<[1], [0], [0], [1], [0, 0, 1, 1], [], []>} : vector<5x10xf32>, vector<10x8xf32>, vector<5x8xf32> -> vector<5x8xf32>
    %c0_9 = arith.constant 0 : index
    %c0_10 = arith.constant 0 : index
    %10 = vector.load %arg5[%c0_9, %c0_10] : memref<5x1xf32, #tpu.memory_space<vmem>>, vector<5x1xf32>
    %11 = vector.broadcast %10 : vector<5x1xf32> to vector<5x8xf32>
    %12 = arith.addf %9, %11 : vector<5x8xf32>
    %cst_11 = arith.constant 0.000000e+00 : f32
    %13 = vector.broadcast %cst_11 : f32 to vector<5x8xf32>
    %14 = arith.maximumf %12, %13 : vector<5x8xf32>
    %c0_12 = arith.constant 0 : index
    %c0_13 = arith.constant 0 : index
    %15 = vector.load %arg6[%c0_12, %c0_13] : memref<3x5xf32, #tpu.memory_space<vmem>>, vector<3x5xf32>
    %cst_14 = arith.constant dense<0.000000e+00> : vector<3x8xf32>
    %16 = tpu.matmul %15, %14, %cst_14 {dimension_numbers = #tpu.dot_dimension_numbers<[1], [0], [0], [1], [0, 0, 1, 1], [], []>} : vector<3x5xf32>, vector<5x8xf32>, vector<3x8xf32> -> vector<3x8xf32>
    %c0_15 = arith.constant 0 : index
    %c0_16 = arith.constant 0 : index
    %17 = vector.load %arg7[%c0_15, %c0_16] : memref<3x1xf32, #tpu.memory_space<vmem>>, vector<3x1xf32>
    %18 = vector.broadcast %17 : vector<3x1xf32> to vector<3x8xf32>
    %19 = arith.addf %16, %18 : vector<3x8xf32>
    %cst_17 = arith.constant 0.000000e+00 : f32
    %20 = vector.broadcast %cst_17 : f32 to vector<3x8xf32>
    %21 = arith.maximumf %19, %20 : vector<3x8xf32>
    %c0_18 = arith.constant 0 : index
    %c0_19 = arith.constant 0 : index
    %22 = vector.load %arg8[%c0_18, %c0_19] : memref<3x3xf32, #tpu.memory_space<vmem>>, vector<3x3xf32>
    %cst_20 = arith.constant dense<0.000000e+00> : vector<3x8xf32>
    %23 = tpu.matmul %22, %21, %cst_20 {dimension_numbers = #tpu.dot_dimension_numbers<[1], [0], [0], [1], [0, 0, 1, 1], [], []>} : vector<3x3xf32>, vector<3x8xf32>, vector<3x8xf32> -> vector<3x8xf32>
    %c0_21 = arith.constant 0 : index
    %c0_22 = arith.constant 0 : index
    %24 = vector.load %arg9[%c0_21, %c0_22] : memref<3x1xf32, #tpu.memory_space<vmem>>, vector<3x1xf32>
    %25 = vector.broadcast %24 : vector<3x1xf32> to vector<3x8xf32>
    %26 = arith.addf %23, %25 : vector<3x8xf32>
    %27 = vector.extract_strided_slice %26 {offsets = [0, 0], sizes = [1, 8], strides = [1, 1]} : vector<3x8xf32> to vector<1x8xf32>
    %28 = vector.extract_strided_slice %26 {offsets = [1, 0], sizes = [1, 8], strides = [1, 1]} : vector<3x8xf32> to vector<1x8xf32>
    %29 = arith.maximumf %27, %28 : vector<1x8xf32>
    %30 = vector.extract_strided_slice %26 {offsets = [2, 0], sizes = [1, 8], strides = [1, 1]} : vector<3x8xf32> to vector<1x8xf32>
    %31 = arith.maximumf %29, %30 : vector<1x8xf32>
    %32 = vector.broadcast %31 : vector<1x8xf32> to vector<3x8xf32>
    %33 = arith.subf %26, %32 : vector<3x8xf32>
    %34 = math.exp %33 : vector<3x8xf32>
    %35 = vector.extract_strided_slice %34 {offsets = [0, 0], sizes = [1, 8], strides = [1, 1]} : vector<3x8xf32> to vector<1x8xf32>
    %36 = vector.extract_strided_slice %34 {offsets = [1, 0], sizes = [1, 8], strides = [1, 1]} : vector<3x8xf32> to vector<1x8xf32>
    %37 = arith.addf %35, %36 : vector<1x8xf32>
    %38 = vector.extract_strided_slice %34 {offsets = [2, 0], sizes = [1, 8], strides = [1, 1]} : vector<3x8xf32> to vector<1x8xf32>
    %39 = arith.addf %37, %38 : vector<1x8xf32>
    %40 = vector.broadcast %39 : vector<1x8xf32> to vector<3x8xf32>
    %41 = arith.divf %34, %40 : vector<3x8xf32>
    %c0_23 = arith.constant 0 : index
    %c0_24 = arith.constant 0 : index
    %42 = vector.load %arg10[%c0_23, %c0_24] : memref<3x8xf32, #tpu.memory_space<vmem>>, vector<3x8xf32>
    tpu.vector_store %arg10[%c0_23, %c0_24], %41 {strides = array<i32>} : memref<3x8xf32, #tpu.memory_space<vmem>>, vector<3x8xf32>,
    return
  }
  func.func @transform_0(%arg0: i32) -> (i32, i32) {
    %c0_i32 = arith.constant 0 : i32
    %c0_i32_0 = arith.constant 0 : i32
    return %c0_i32, %arg0 : i32, i32
  }
  func.func @transform_1(%arg0: i32) -> (i32, i32) {
    %c0_i32 = arith.constant 0 : i32
    %c0_i32_0 = arith.constant 0 : i32
    %c0_i32_1 = arith.constant 0 : i32
    return %c0_i32, %c0_i32_0 : i32, i32
  }
  func.func @transform_2(%arg0: i32) -> (i32, i32) {
    %c0_i32 = arith.constant 0 : i32
    %c0_i32_0 = arith.constant 0 : i32
    %c0_i32_1 = arith.constant 0 : i32
    return %c0_i32, %c0_i32_0 : i32, i32
  }
  func.func @transform_3(%arg0: i32) -> (i32, i32) {
    %c0_i32 = arith.constant 0 : i32
    %c0_i32_0 = arith.constant 0 : i32
    %c0_i32_1 = arith.constant 0 : i32
    return %c0_i32, %c0_i32_0 : i32, i32
  }
  func.func @transform_4(%arg0: i32) -> (i32, i32) {
    %c0_i32 = arith.constant 0 : i32
    %c0_i32_0 = arith.constant 0 : i32
    %c0_i32_1 = arith.constant 0 : i32
    return %c0_i32, %c0_i32_0 : i32, i32
  }
  func.func @transform_5(%arg0: i32) -> (i32, i32) {
    %c0_i32 = arith.constant 0 : i32
    %c0_i32_0 = arith.constant 0 : i32
    %c0_i32_1 = arith.constant 0 : i32
    return %c0_i32, %c0_i32_0 : i32, i32
  }
  func.func @transform_6(%arg0: i32) -> (i32, i32) {
    %c0_i32 = arith.constant 0 : i32
    %c0_i32_0 = arith.constant 0 : i32
    %c0_i32_1 = arith.constant 0 : i32
    return %c0_i32, %c0_i32_0 : i32, i32
  }
  func.func @transform_7(%arg0: i32) -> (i32, i32) {
    %c0_i32 = arith.constant 0 : i32
    %c0_i32_0 = arith.constant 0 : i32
    %c0_i32_1 = arith.constant 0 : i32
    return %c0_i32, %c0_i32_0 : i32, i32
  }
  func.func @transform_8(%arg0: i32) -> (i32, i32) {
    %c0_i32 = arith.constant 0 : i32
    %c0_i32_0 = arith.constant 0 : i32
    %c0_i32_1 = arith.constant 0 : i32
    return %c0_i32, %c0_i32_0 : i32, i32
  }
  func.func @transform_9(%arg0: i32) -> (i32, i32) {
    %c0_i32 = arith.constant 0 : i32
    %c0_i32_0 = arith.constant 0 : i32
    return %c0_i32, %arg0 : i32, i32
  }
}

</mosaic_0001>

<bundles_post_ra>
// kernel: tpu_custom_call.1
= control target key start
LH: loop header
LB: loop body
LE: loop exit
PB: predicated region body
PF: predicated region fallthrough
CT: control target
= control target key end

     0   :  { %vm55_vm0 = vcmask 1045504   ;;  %vm48_vm1 = vcmask 48128   ;;  %v517_v4 = vmov 0   ;;  %s621_s0 = inlined_call_operand.vmem [shape: f32[6,8], index: 0, kind: input, shape index: {}]   ;;  %s622_s1 = inlined_call_operand.vmem [shape: f32[10,6], index: 1, kind: input, shape index: {}]   ;;  %s623_s2 = inlined_call_operand.vmem [shape: f32[10,1], index: 2, kind: input, shape index: {}]   ;;  %s624_s3 = inlined_call_operand.vmem [shape: f32[5,10], index: 3, kind: input, shape index: {}]   ;;  %s625_s4 = inlined_call_operand.vmem [shape: f32[5,1], index: 4, kind: input, shape index: {}]   ;;  %s626_s5 = inlined_call_operand.vmem [shape: f32[3,5], index: 5, kind: input, shape index: {}]   ;;  %s627_s6 = inlined_call_operand.vmem [shape: f32[3,1], index: 6, kind: input, shape index: {}]   ;;  %s628_s7 = inlined_call_operand.vmem [shape: f32[3,3], index: 7, kind: input, shape index: {}]   ;;  %s629_s8 = inlined_call_operand.vmem [shape: f32[3,1], index: 8, kind: input, shape index: {}]   ;;  %s630_s9 = inlined_call_operand.hbm [shape: f32[3,8], index: 9, kind: output, shape index: {}]  }
   0x1   :  { %v33_v0 = vld [vmem:[%s621_s0] sm:$0x3f]  ;;  %v35_v2 = vld [vmem:[%s622_s1 + $0x8] sm:$0x3]  ;;  %487 = vset.pattern.permute.xlu0 %v517_v4 }
   0x2   :  { %v34_v1 = vld [vmem:[%s622_s1] sm:$0xff]  ;;  %455 = vmatprep.subr.msk.mxu0 %vm55_vm0, %v33_v0 }
   0x3   :  { %457 = vmatprep.mubr.msk.f32.mxu0 %vm48_vm1, %v34_v1  ;;  %v36_v3 = vld [vmem:[%s623_s2] sm:$0xff]  ;;  %456 = vmatpush3.msk.msra.mxu0 %vm55_vm0, %v33_v0 }
   0x4   :  { %14 = vsyncpa [#allocation3], 0  ;;  %458 = vmatmul.mubr.msk.f32.vlgmr.msra.gmra.mrb[0].mxu0 %vm48_vm1, %v35_v2  ;;  %40 = vperm.xlu0 %487, %v36_v3   ;;  %v37_v5 = vld [vmem:[%s623_s2 + $0x8] sm:$0x3]  ;;  %v309_v6 = vld [vmem:[%s629_s8] sm:$0x7]  ;;  %v400_v33 = vlaneseq }
   0x5   :  { %488 = vset.pattern.permute.xlu1 %v517_v4  ;;  %v518_v7 = vmov 0.0|0.0   ;;  %vm519_vm2 = vmmov 0   ;;  %v520_v8 = vmov 0.0   ;;  %v137_v9 = vld [vmem:[%s625_s4] sm:$0x1f]  ;;  %vm147_vm3 = vcmask 1041408  }
   0x6   :  { %477 = vmatprep.subr.bf16.mxu1 %v518_v7  ;;  %464 = vmatprep.mubr.msk.f32.mxu1 %vm519_vm2, %v520_v8  ;;  %v223_v10 = vld [vmem:[%s627_s6] sm:$0x7]  ;;  %vm521_vm4 = vmmov 1   ;;  %vm143_vm6 = vcmask 80896   ;;  %vm233_vm7 = vcmask 1044480   ;;  %vm229_vm8 = vcmask 39936  }
   0x7   :  { %467 = vmatprep.subr.mxu0 %v520_v8  ;;  %469 = vmatprep.mubr.msk.f32.mxu0 %vm519_vm2, %v520_v8  ;;  %vm479_vm5 = vmpackc.low %vm147_vm3, %vm521_vm4  ;;  %v136_v20 = vld [vmem:[%s624_s3] sm:$0x1f]  ;;  %vm319_vm9 = vcmask 1042432   ;;  %vm315_vm10 = vcmask 23552   ;;  %v401_v37 = vshrl.u32 %v400_v33, 7  ;;  %vm420_vm11 = vcmask 59392  }
   0x8   :  { %45 = vperm.xlu0 %487, %v37_v5   ;;  %140 = vperm.xlu1 %488, %v137_v9   ;;  %v222_v26 = vld [vmem:[%s626_s5] sm:$0x7]  ;;  %s522_s5 = smov [#allocation2]  }
   0x9   :  { %v308_v32 = vld [vmem:[%s628_s7] sm:$0x7]  ;;  %v402_v42 = vsub.s32 0, %v401_v37  ;;  %s428_s7 = sshll.u32 %s522_s5, 4  ;;  %s429_s7 = int_to_ptr.vmem [resolvable:$true] %s428_s7 }
   0xa   :  { %s493_s24 = scalar_lea.vmem %s429_s7, 64  ;;  %p498_p1 = scmp.lt.s32.totalorder %s429_s7, %s429_s7 }
   0xb   :  { %p494_p0 = scmp.ne.s32.totalorder %s429_s7, %s493_s24  ;;  %p499_p2 = scmp.lt.s32.totalorder %s493_s24, %s493_s24 }
   0xc   :  { %312 = vperm.xlu0 %487, %v309_v6   ;;  %226 = vperm.xlu1 %488, %v223_v10  }
   0xd   :  { %p500_p3 = por %p499_p2, %p498_p1 }
   0xf   :  { %p501_p4 = pnand %p500_p3, %p494_p0 }
  0x83   :  { %v41_v11 = vpop.permute.xlu0 %40 }
  0x87   :  { %v46_v12 = vpop.permute.xlu0 %45  ;;  %v141_v21 = vpop.permute.xlu1 %140 }
  0x8b   :  { %v227_v27 = vpop.permute.xlu1 %226  ;;  %v313_v34 = vpop.permute.xlu0 %312 }
  0xd7   :  { %v459_v13 = vpop.f32.mrb[0].mxu0 }
  0xd8   :  { %v131_v14 = vadd.f32 %v459_v13, %v46_v12  ;;  %v125_v15 = vpop.f32.mrb[1].mxu0 }
  0xd9   :  { %v126_v16 = vadd.f32 %v125_v15, %v41_v11 }
  0xda   :  { %v135_v17 = vmax.f32 %v131_v14, 0.0 }
  0xdb   :  { %v134_v18 = vmax.f32 %v126_v16, 0.0 }
  0xdd   :  { %v478_v19 = vpack.c.bf16 %v135_v17, %v134_v18 }
  0xdf   :  { %480 = vmatpush3.bf16.msk.msra.mxu1 %vm479_vm5, %v478_v19 }
  0xe0   :  { %472 = vmatprep.subr.mxu1 %v520_v8 }
  0xe2   :  { %465 = vmatmul.mubr.msk.f32.vlgmr.msra.gmra.mrb[0].mxu1 %vm143_vm6, %v136_v20 }
  0xe3   :  { %474 = vmatprep.mubr.msk.f32.mxu1 %vm519_vm2, %v520_v8 }
 0x1b5   :  { %v217_v22 = vpop.f32.mrb[0].mxu1 }
 0x1b6   :  { %v218_v23 = vadd.f32 %v217_v22, %v141_v21  ;;  %v466_v24 = vpop.f32.mrb[1].mxu1 }
 0x1b8   :  { %v221_v25 = vmax.f32 %v218_v23, 0.0 }
 0x1ba   :  { %468 = vmatpush3.msk.msra.mxu0 %vm233_vm7, %v221_v25 }
 0x1bb   :  { %470 = vmatmul.mubr.msk.f32.vlgmr.msra.gmra.mrb[2].mxu0 %vm229_vm8, %v222_v26 }
 0x28e   :  { %v303_v28 = vpop.f32.mrb[2].mxu0 }
 0x28f   :  { %v304_v29 = vadd.f32 %v303_v28, %v227_v27  ;;  %v471_v30 = vpop.f32.mrb[3].mxu0 }
 0x291   :  { %v307_v31 = vmax.f32 %v304_v29, 0.0 }
 0x293   :  { %473 = vmatpush3.msk.msra.mxu1 %vm319_vm9, %v307_v31 }
 0x294   :  { %475 = vmatmul.mubr.msk.f32.vlgmr.msra.gmra.mrb[2].mxu1 %vm315_vm10, %v308_v32 }
 0x367   :  { %v389_v35 = vpop.f32.mrb[2].mxu1 }
 0x368   :  { %v390_v36 = vadd.f32 %v389_v35, %v313_v34  ;;  %v476_v38 = vpop.f32.mrb[3].mxu1 }
 0x36a   :  { %v394_v39 = vrot.slane %v390_v36, 1  ;;  %v397_v41 = vrot.slane %v390_v36, 2 }
 0x36c   :  { %v396_v40 = vmax.f32 %v390_v36, %v394_v39 }
 0x36e   :  { %v399_v43 = vmax.f32 %v396_v40, %v397_v41 }
 0x370   :  { %v403_v44 = vrot.slane %v399_v43, %v402_v42 }
 0x372   :  { %v404_v45 = vsub.f32 %v390_v36, %v403_v44 }
 0x374   :  { %v405_v46 = vmul.f32 1.442695, %v404_v45 }
 0x376   :  { %489 = vpow2.f32 %v405_v46 }
 0x380   :  { %v490_v47 = vpop.eup %489 }
 0x381   :  { %v408_v48 = vrot.slane %v490_v47, 1  ;;  %v411_v50 = vrot.slane %v490_v47, 2 }
 0x383   :  { %v410_v49 = vadd.f32 %v490_v47, %v408_v48 }
 0x385   :  { %v413_v51 = vadd.f32 %v411_v50, %v410_v49 }
 0x387   :  { %v417_v52 = vrot.slane %v413_v51, %v402_v42 }
 0x389   :  { %491 = vrcp.f32 %v417_v52 }
 0x393   :  { %v492_v53 = vpop.eup %491 }
 0x394   :  { %v419_v54 = vmul.f32 %v492_v53, %v490_v47 }
 0x396   :  { %421 = vst.msk [vmem:[#allocation2] sm:$0x7] %vm420_vm11, %v419_v54 }
 0x397   :  { %504 = shalt.err (!%p501_p4)
}
 0x398   :  { %s505_s27 = scalar_lea.hbm %s630_s9, 64 }
 0x399   :  { %p506_p5 = scmp.ne.s32.totalorder %s630_s9, %s505_s27  ;;  %p509_p6 = scmp.lt.u32.totalorder %s505_s27, %s630_s9 }
 0x39b   :  { %p511_p7 = pnand %p509_p6, %p506_p5 }
 0x39d   :  { %514 = shalt.err (!%p511_p7)
}
 0x39e   :  { %431 = dma.vmem_to_hbm [thread:$0]  %s429_s7, 64, %s630_s9, [#allocation3]  }
 0x39f   :  { %515 = dma.done.wait [#allocation3], 64  }
 0x3a0   :  { %516 = vsyncadd [#allocation3], 4294967232 }
 0x3a1   :  { %435 = vsyncpa [#allocation3], 1 }

</bundles_post_ra>
